<compile_context>
chip_gen: v7x
topology: tpu7x:2x2x1
jax: 0.10.0
libtpu: 0.0.40
codegen_flags: <defaults>
</compile_context>

<pallas_src>
import functools

import jax
import jax.numpy as jnp
from jax import lax
from jax.experimental import pallas as pl
from jax.experimental.pallas import tpu as pltpu

_LANE = 128
_SUBLANE = 8
# Contract the last dim of both operands: A(1, K) x B(M, K) -> (1, M).
_NT_DIMS = (((1,), (1,)), ((), ()))
_TINY_BYTES = 1 << 20            # below this, a plain XLA dot beats pallas_call overhead
_SMALL_TILE_BYTES = 1 << 20      # below this per-tile payload, use 3-deep buffering
_TILE_PAYLOAD_TARGET = 4 << 20   # aim for >= ~4 MiB of real x bytes per grid step


def _round_up(x, m):
    return ((x + m - 1) // m) * m


def _vmem_limit_bytes():
    """Generation-aware scoped-VMEM limit (v7x: 64 MiB physical, v5e/v6e: 128 MiB)."""
    phys = 64 * 1024 * 1024  # conservative fallback (v7x-sized)
    try:
        phys = int(getattr(pltpu.get_tpu_info(), "vmem_capacity_bytes", phys))
    except Exception:
        pass
    # ~3/4 of physical, clamped: 48 MiB on v7x, 96 MiB on v5e/v6e.
    return max(32 * 1024 * 1024, min(100 * 1024 * 1024, (phys * 3) // 4))


def _x_block_spec(shape, index_map, *, buffers):
    """x BlockSpec with optional >2-deep buffering (falls back if unsupported)."""
    if buffers > 2:
        try:
            return pl.BlockSpec(shape, index_map, pipeline_mode=pl.Buffered(buffers))
        except Exception:  # older jax without pipeline_mode / Buffered
            pass
    return pl.BlockSpec(shape, index_map)


def _pick_tile_rows(n_rows, row_bytes_vmem, row_bytes_real, x_budget, align, tile_rows):
    """Biggest row tile that fits the (double-buffered) x budget, but keep >= 2
    tiles for v7x's two TensorCores and ~8 tiles while tiles stay >= ~4 MiB."""
    if tile_rows is not None:
        tm = max(align, _round_up(int(tile_rows), align))
    else:
        total = n_rows * row_bytes_real
        want_tiles = int(max(2, min(8, total // _TILE_PAYLOAD_TARGET)))
        tm = _round_up(max(1, pl.cdiv(n_rows, want_tiles)), align)
    cap = max(align, (x_budget // (2 * row_bytes_vmem)) // align * align)
    tm = min(tm, cap)
    tm = min(tm, _round_up(n_rows, align))
    return max(tm, align)


def _gemv_kernel(x_ref, w_ref, *rest, use_bias, clamp, mask_cols, d_valid):
    """Unpacked path.  x_ref: (tm, tk); w_ref: (1, tk); [b_ref: (1, 1) SMEM];
    o_ref: (1, tm); acc_ref: (1, tm) f32 scratch.  Grid: (row_tiles, k_tiles)."""
    if use_bias:
        b_ref, o_ref, acc_ref = rest
    else:
        o_ref, acc_ref = rest
    k = pl.program_id(1)

    @pl.when(k == 0)
    def _():
        acc_ref[...] = jnp.zeros_like(acc_ref)

    x = x_ref[...]
    if mask_cols:
        # Ragged feature tail of the last K block: zero the out-of-range columns
        # (w is zero-padded on the host, so the pair contributes exactly 0).
        tk = x_ref.shape[1]
        col = k * tk + lax.broadcasted_iota(jnp.int32, x_ref.shape, 1)
        x = jnp.where(col < d_valid, x, jnp.zeros_like(x))

    # (1, tk) x (tm, tk) contracted on tk -> (1, tm): rows land on the lane axis,
    # so the final store below is a full-width (lane-dense) vst.
    acc_ref[...] += lax.dot_general(
        w_ref[...], x, dimension_numbers=_NT_DIMS,
        preferred_element_type=jnp.float32)

    @pl.when(k == pl.num_programs(1) - 1)
    def _():
        h = acc_ref[...]
        if use_bias:
            h = h + b_ref[0, 0]          # scalar read from SMEM, VPU broadcast
        if clamp:
            h = jnp.clip(h, -10.0, 10.0)
        o_ref[...] = h.astype(o_ref.dtype)


def _packed_kernel(x_ref, w_ref, *rest, use_bias, clamp):
    """Packed small-D path.  x_ref: (tmp, G*d); w_ref: (G*d, G) block-diagonal;
    [b_ref: (1, 1) SMEM]; o_ref: (tmp, G).  Grid: (row_tiles,)."""
    if use_bias:
        b_ref, o_ref = rest
    else:
        (o_ref,) = rest
    h = jnp.dot(x_ref[...], w_ref[...], preferred_element_type=jnp.float32)
    if use_bias:
        h = h + b_ref[0, 0]
    if clamp:
        h = jnp.clip(h, -10.0, 10.0)
    o_ref[...] = h.astype(o_ref.dtype)


def custom_linear_forward(x, w, b=None, *, fix_weight_dim=None, clamp=False,
                          tile_rows=None, tile_k=None, compute_dtype=None,
                          use_pallas=None):
    """Forward pass of CustomLinearModel; returns (N, 1) float32.

    x: (N, D); w: (D_in, 1) with D_in = D - 1 if fix_weight_dim is not None else D;
    b: (1, 1) or None.
    tile_rows: rows per grid step along the kernel's row axis (packed rows when the
      small-D packing is active).  tile_k: feature-axis tile (forces K tiling).
    compute_dtype: optionally stream x / w as e.g. jnp.bfloat16 (f32 accumulate);
      cheapest when x is already stored in that dtype.
    use_pallas: None = auto (tiny problems use a plain XLA dot), True/False = force.
    """
    x = jnp.asarray(x)
    n, d = x.shape
    use_bias = b is not None

    # Zeroed-weight trick instead of a feature-column gather: a full-width (d,)
    # weight with w[fix_weight_dim] == 0 lets the kernel stream the ORIGINAL x once.
    w_col = jnp.asarray(w, jnp.float32).reshape(-1)
    if fix_weight_dim is not None:
        assert w_col.shape[0] == d - 1, (w_col.shape, d)
        w_full = jnp.concatenate(
            [w_col[:fix_weight_dim], jnp.zeros((1,), jnp.float32),
             w_col[fix_weight_dim:]])
    else:
        assert w_col.shape[0] == d, (w_col.shape, d)
        w_full = w_col

    if use_pallas is None:
        use_pallas = n * d * 4 >= _TINY_BYTES
    if not use_pallas:
        # pallas_call fixed cost dominates at tiny sizes; a fused XLA dot wins.
        h = x.astype(jnp.float32) @ w_full.reshape(d, 1)
        if use_bias:
            h = h + jnp.asarray(b, jnp.float32).reshape(1, 1)
        return jnp.clip(h, -10.0, 10.0) if clamp else h

    stream_dtype = jnp.dtype(compute_dtype) if compute_dtype is not None else jnp.dtype(jnp.float32)
    itemsize = stream_dtype.itemsize
    vmem_limit = _vmem_limit_bytes()
    x_budget = (vmem_limit * 2) // 3          # w / out / acc / misc take the rest
    b_arr = jnp.asarray(b, jnp.float32).reshape(1, 1) if use_bias else None

    # ---- small-D packing factor: G rows per lane-row (free bitcast reshape) ----
    g = 1
    if d < _LANE:
        for cand in range(min(_LANE // d, n), 1, -1):
            if n % cand == 0:
                g = cand
                break
    # TODO(synk): when no G > 1 divides n, peel the ragged tail into a second call
    # instead of falling back to the unpacked (lane-padded) path.

    if g > 1:
        # -------- packed path: (n/G, G*d) @ (G*d, G) block-diagonal, NN ---------
        dp = g * d
        n_rows = n // g
        x_v = x.reshape(n_rows, dp)            # zero-copy row-major view of x
        # (dp, G) block-diagonal weight: column h holds w_full in rows h*d:(h+1)*d.
        w_bd = (jnp.eye(g, dtype=jnp.float32)[:, None, :]
                * w_full[None, :, None]).reshape(dp, g)
        x_v = x_v.astype(stream_dtype)
        w_bd = w_bd.astype(stream_dtype)

        align = _SUBLANE
        row_bytes = max(_round_up(dp, _LANE), _LANE) * itemsize   # lane-padded VMEM row
        real_row_bytes = dp * itemsize
        tm = _pick_tile_rows(n_rows, row_bytes, real_row_bytes, x_budget, align,
                             tile_rows)
        num_tiles = pl.cdiv(n_rows, tm)
        buffers = 3 if (num_tiles >= 4 and tm * real_row_bytes < _SMALL_TILE_BYTES
                        and 3 * tm * row_bytes <= x_budget) else 2

        in_specs = [
            _x_block_spec((tm, dp), lambda i: (i, 0), buffers=buffers),  # x tiles
            pl.BlockSpec((dp, g), lambda i: (0, 0)),                     # resident W
        ]
        args = [x_v, w_bd]
        if use_bias:
            in_specs.append(pl.BlockSpec(memory_space=pltpu.MemorySpace.SMEM))
            args.append(b_arr)

        kernel = functools.partial(_packed_kernel, use_bias=use_bias, clamp=clamp)
        out = pl.pallas_call(
            kernel,
            out_shape=jax.ShapeDtypeStruct((n_rows, g), jnp.float32),
            grid=(num_tiles,),
            in_specs=in_specs,
            out_specs=pl.BlockSpec((tm, g), lambda i: (i, 0)),
            compiler_params=pltpu.CompilerParams(
                dimension_semantics=("parallel",),   # v7x: 2 TCs split row tiles
                vmem_limit_bytes=vmem_limit,
            ),
        )(*args)
        return out.reshape(n, 1)                 # free: (n/G, G) is row-major order

    # ---- unpacked path: w(1, tk) x X(tm, tk)^T -> lane-dense (1, tm) output ----
    align = _LANE                                # out block (1, tm) => tm % 128 == 0
    d_lane = max(_round_up(d, _LANE), _LANE)

    # Feature-axis (K) tiling when even modest row tiles would blow the VMEM budget
    # (v7x: 64 MiB physical) or when explicitly requested.
    if tile_k is not None:
        tk = min(max(_LANE, _round_up(int(tile_k), _LANE)), d_lane)
    elif 2 * (2 * align) * d_lane * itemsize > x_budget:
        tm_target = 4 * align                    # keep a big row tile per K slab
        tk = max(_LANE, (x_budget // (2 * tm_target * itemsize)) // _LANE * _LANE)
        tk = min(tk, d_lane)
    else:
        tk = d                                   # single K step, full-width block
    k_tiles = pl.cdiv(d, tk)
    mask_cols = (k_tiles > 1) and (d % tk != 0)

    w_row = w_full
    if k_tiles * tk != d:                        # pad w (tiny) so its blocks are exact
        w_row = jnp.concatenate(
            [w_row, jnp.zeros((k_tiles * tk - d,), jnp.float32)])
    w_row = w_row.reshape(1, k_tiles * tk)

    x_v = x.astype(stream_dtype)
    w_row = w_row.astype(stream_dtype)

    row_bytes = max(_round_up(tk, _LANE), _LANE) * itemsize   # lane-padded VMEM row
    real_row_bytes = min(tk, d) * itemsize
    tm = _pick_tile_rows(n, row_bytes, real_row_bytes, x_budget, align, tile_rows)
    num_row_tiles = pl.cdiv(n, tm)
    n_pad = num_row_tiles * tm                   # pad only the tiny output, never x
    buffers = 3 if (num_row_tiles * k_tiles >= 4
                    and tm * real_row_bytes < _SMALL_TILE_BYTES
                    and 3 * tm * row_bytes <= x_budget) else 2

    in_specs = [
        _x_block_spec((tm, tk), lambda i, k: (i, k), buffers=buffers),  # x tiles
        pl.BlockSpec((1, tk), lambda i, k: (0, k)),                     # weight row
    ]
    args = [x_v, w_row]
    if use_bias:
        in_specs.append(pl.BlockSpec(memory_space=pltpu.MemorySpace.SMEM))
        args.append(b_arr)

    kernel = functools.partial(_gemv_kernel, use_bias=use_bias, clamp=clamp,
                               mask_cols=mask_cols, d_valid=d)
    out_row = pl.pallas_call(
        kernel,
        out_shape=jax.ShapeDtypeStruct((1, n_pad), jnp.float32),
        grid=(num_row_tiles, k_tiles),           # reduction (K) axis last
        in_specs=in_specs,
        out_specs=pl.BlockSpec((1, tm), lambda i, k: (0, i)),   # lane-dense output
        scratch_shapes=[pltpu.VMEM((1, tm), jnp.float32)],
        compiler_params=pltpu.CompilerParams(
            dimension_semantics=("parallel", "arbitrary"),
            vmem_limit_bytes=vmem_limit,
        ),
    )(*args)
    return out_row[0, :n].reshape(n, 1)


def init_params(key, d, *, use_bias=False, fix_weight_dim=None):
    """Deterministic init mimicking nn.Linear's U(-1/sqrt(fan_in), 1/sqrt(fan_in))."""
    d_in = d - 1 if fix_weight_dim is not None else d
    kw, kb = jax.random.split(key)
    bound = 1.0 / jnp.sqrt(jnp.float32(d_in))
    w = jax.random.uniform(kw, (d_in, 1), jnp.float32, -bound, bound)
    b = (jax.random.uniform(kb, (1, 1), jnp.float32, -bound, bound)
         if use_bias else None)
    return w, b


def _reference(x, w, b=None, *, fix_weight_dim=None, clamp=False):
    d = x.shape[1]
    dims = list(range(d))
    if fix_weight_dim is not None:
        dims.remove(fix_weight_dim)
    h = x[:, jnp.array(dims)] @ w
    if b is not None:
        h = h + b
    return jnp.clip(h, -10.0, 10.0) if clamp else h


if __name__ == "__main__":
    key = jax.random.PRNGKey(0)
    keys = jax.random.split(key, 8)
    checks = []

    def run(name, n, d, *, use_bias, fix_weight_dim, clamp, key_x, key_p, **kw):
        x = jax.random.normal(key_x, (n, d), jnp.float32) * 5.0
        w, b = init_params(key_p, d, use_bias=use_bias, fix_weight_dim=fix_weight_dim)
        out = custom_linear_forward(x, w, b, fix_weight_dim=fix_weight_dim,
                                    clamp=clamp, **kw)
        ref = _reference(x, w, b, fix_weight_dim=fix_weight_dim, clamp=clamp)
        checks.append((name, out, ref))

    # 1) tiny problem -> auto bypass (plain XLA dot).
    run("bypass", 8, 4, use_bias=False, fix_weight_dim=None, clamp=False,
        key_x=keys[0], key_p=keys[1])
    # 2) packed small-D kernel, G=32 (dp=128, lane-dense), bias + clamp.
    run("packed", 256, 4, use_bias=True, fix_weight_dim=0, clamp=True,
        key_x=keys[2], key_p=keys[3], use_pallas=True)
    # 3) packed, ragged rows (G=30 divides 300): 2 row tiles with a partial tail.
    run("packed_ragged", 300, 4, use_bias=True, fix_weight_dim=2, clamp=True,
        key_x=keys[4], key_p=keys[5], use_pallas=True)
    # 4) packed, many small tiles -> exercises pl.Buffered(3) multi-buffering.
    run("packed_buf3", 2048, 4, use_bias=True, fix_weight_dim=1, clamp=False,
        key_x=keys[6], key_p=keys[7], use_pallas=True, tile_rows=8)
    # 5) unpacked lane-dense path (d >= 128), partial row tile, single K step.
    run("unpacked", 40, 160, use_bias=True, fix_weight_dim=3, clamp=True,
        key_x=keys[0], key_p=keys[2], use_pallas=True)
    # 6) unpacked with forced K tiling (ragged feature tail -> in-kernel masking).
    run("ktiled", 40, 160, use_bias=True, fix_weight_dim=None, clamp=True,
        key_x=keys[1], key_p=keys[3], use_pallas=True, tile_rows=128, tile_k=128)

    # 7) bf16-streaming flag: compare against a bf16-cast reference.
    xb = jax.random.normal(keys[4], (256, 4), jnp.float32) * 5.0
    wb, bb = init_params(keys[5], 4, use_bias=True, fix_weight_dim=None)
    out_bf16 = custom_linear_forward(xb, wb, bb, clamp=True, use_pallas=True,
                                     compute_dtype=jnp.bfloat16)
    xb16 = xb.astype(jnp.bfloat16).astype(jnp.float32)
    wb16 = wb.astype(jnp.bfloat16).astype(jnp.float32)
    ref_bf16 = jnp.clip(xb16 @ wb16 + bb, -10.0, 10.0)
    checks.append(("bf16", out_bf16, ref_bf16))

    jax.block_until_ready([o for _, o, _ in checks])

    for name, out, ref in checks:
        assert out.shape == ref.shape, (name, out.shape, ref.shape)
        err = float(jnp.max(jnp.abs(out - ref)))
        assert jnp.allclose(out, ref, atol=1e-3, rtol=1e-3), (name, err)

    print("KERNEL_OK")
</pallas_src>

<mosaic_0001>
module attributes {stable_mosaic.version = 11 : i64} {
  func.func @_packed_kernel(%arg0: i32, %arg1: memref<8x128xf32, #tpu.memory_space<vmem>>, %arg2: memref<128x32xf32, #tpu.memory_space<vmem>>, %arg3: memref<1x1xf32, #tpu.memory_space<smem>>, %arg4: memref<8x32xf32, #tpu.memory_space<vmem>>) attributes {dimension_semantics = [#tpu.dimension_semantics<parallel>], iteration_bounds = array<i64: 1>, scalar_prefetch = 0 : i64, scratch_operands = 0 : i64, tpu.core_type = #tpu.core_type<tc>, window_params = [{transform_indices = @transform_0, window_bounds = array<i64: 8, 128>}, {pipeline_mode = #tpu.pipeline_mode<synchronous>, transform_indices = @transform_1, window_bounds = array<i64: 128, 32>}, {transform_indices = @transform_2, window_bounds = array<i64: 1, 1>}, {transform_indices = @transform_3, window_bounds = array<i64: 8, 32>}]} {
    %c0 = arith.constant 0 : index
    %c0_0 = arith.constant 0 : index
    %0 = vector.load %arg1[%c0, %c0_0] : memref<8x128xf32, #tpu.memory_space<vmem>>, vector<8x128xf32>
    %c0_1 = arith.constant 0 : index
    %c0_2 = arith.constant 0 : index
    %1 = vector.load %arg2[%c0_1, %c0_2] : memref<128x32xf32, #tpu.memory_space<vmem>>, vector<128x32xf32>
    %cst = arith.constant dense<0.000000e+00> : vector<8x32xf32>
    %2 = tpu.matmul %0, %1, %cst {dimension_numbers = #tpu.dot_dimension_numbers<[1], [0], [0], [1], [0, 0, 1, 1], [], []>} : vector<8x128xf32>, vector<128x32xf32>, vector<8x32xf32> -> vector<8x32xf32>
    %c0_3 = arith.constant 0 : index
    %c0_4 = arith.constant 0 : index
    %3 = memref.load %arg3[%c0_3, %c0_4] : memref<1x1xf32, #tpu.memory_space<smem>>
    %4 = vector.broadcast %3 : f32 to vector<8x32xf32>
    %5 = arith.addf %2, %4 : vector<8x32xf32>
    %cst_5 = arith.constant -1.000000e+01 : f32
    %cst_6 = arith.constant 1.000000e+01 : f32
    %6 = vector.broadcast %cst_5 : f32 to vector<8x32xf32>
    %7 = arith.maximumf %6, %5 : vector<8x32xf32>
    %8 = vector.broadcast %cst_6 : f32 to vector<8x32xf32>
    %9 = arith.minimumf %8, %7 : vector<8x32xf32>
    %c0_7 = arith.constant 0 : index
    %c0_8 = arith.constant 0 : index
    %10 = vector.load %arg4[%c0_7, %c0_8] : memref<8x32xf32, #tpu.memory_space<vmem>>, vector<8x32xf32>
    tpu.vector_store %arg4[%c0_7, %c0_8], %9 {strides = array<i32>} : memref<8x32xf32, #tpu.memory_space<vmem>>, vector<8x32xf32>,
    return
  }
  func.func @transform_0(%arg0: i32) -> (i32, i32) {
    %c0_i32 = arith.constant 0 : i32
    %c0_i32_0 = arith.constant 0 : i32
    return %arg0, %c0_i32 : i32, i32
  }
  func.func @transform_1(%arg0: i32) -> (i32, i32) {
    %c0_i32 = arith.constant 0 : i32
    %c0_i32_0 = arith.constant 0 : i32
    %c0_i32_1 = arith.constant 0 : i32
    return %c0_i32, %c0_i32_0 : i32, i32
  }
  func.func @transform_2(%arg0: i32) -> (i32, i32) {
    %c0_i32 = arith.constant 0 : i32
    %c0_i32_0 = arith.constant 0 : i32
    %c0_i32_1 = arith.constant 0 : i32
    return %c0_i32, %c0_i32_0 : i32, i32
  }
  func.func @transform_3(%arg0: i32) -> (i32, i32) {
    %c0_i32 = arith.constant 0 : i32
    %c0_i32_0 = arith.constant 0 : i32
    return %arg0, %c0_i32 : i32, i32
  }
}

</mosaic_0001>

<bundles_post_ra>
// kernel: tpu_custom_call.1
= control target key start
LH: loop header
LB: loop body
LE: loop exit
PB: predicated region body
PF: predicated region fallthrough
CT: control target
= control target key end

     0   :  { %v228_v3 = vmov 0.0|0.0   ;;  %vm229_vm0 = vmmov 0   ;;  %v230_v6 = vmov 0.0   ;;  %s318_s0 = inlined_call_operand.vmem [shape: f32[8,128], index: 0, kind: input, shape index: {}]   ;;  %s319_s1 = inlined_call_operand.vmem [shape: f32[128,32], index: 1, kind: input, shape index: {}]   ;;  %s320_s2 = inlined_call_operand.<no memory space> [shape: f32[1,1], index: 2, kind: input, shape index: {}]   ;;  %s321_s3 = inlined_call_operand.hbm [shape: f32[8,32], index: 3, kind: output, shape index: {}]  }
   0x1   :  { %v17_v0 = vld [vmem:[%s319_s1] sm:$0xff]  ;;  %v18_v1 = vld [vmem:[%s319_s1 + $0x8] sm:$0xff]  ;;  %v19_v2 = vld [vmem:[%s319_s1 + $0x10] sm:$0xff]  ;;  %176 = vmatprep.subr.bf16.mxu0 %v228_v3  ;;  %173 = vmatprep.mubr.msk.f32.mxu0 %vm229_vm0, %v230_v6 }
   0x2   :  { %v177_v4 = vpack.c.bf16 %v18_v1, %v17_v0  ;;  %v20_v5 = vld [vmem:[%s319_s1 + $0x18] sm:$0xff]  ;;  %v21_v8 = vld [vmem:[%s319_s1 + $0x20] sm:$0xff]  ;;  %v22_v9 = vld [vmem:[%s319_s1 + $0x28] sm:$0xff] }
   0x3   :  { %v180_v7 = vpack.c.bf16 %v20_v5, %v19_v2 }
   0x4   :  { %178 = vmatpush3.bf16.msra.mxu0 %v177_v4 }
   0x5   :  { %179 = vmatprep.subr.bf16.mxu0 %v228_v3 }
   0x6   :  { %9 = vsyncpa [#allocation4], 0  ;;  %v183_v10 = vpack.c.bf16 %v22_v9, %v21_v8  ;;  %v23_v11 = vld [vmem:[%s319_s1 + $0x30] sm:$0xff]  ;;  %v24_v12 = vld [vmem:[%s319_s1 + $0x38] sm:$0xff]  ;;  %v34_v27 = vstv %s320_s2  ;;  %s231_s21 = smov [#allocation3]   ;;  %vm107_vm1 = vcmask 261120  }
   0x7   :  { %v186_v13 = vpack.c.bf16 %v24_v12, %v23_v11  ;;  %v25_v14 = vld [vmem:[%s319_s1 + $0x40] sm:$0xff]  ;;  %v26_v15 = vld [vmem:[%s319_s1 + $0x48] sm:$0xff]  ;;  %v27_v17 = vld [vmem:[%s319_s1 + $0x50] sm:$0xff]  ;;  %s115_s22 = sshll.u32 %s231_s21, 4  ;;  %s116_s22 = int_to_ptr.vmem [resolvable:$true] %s115_s22 }
   0x8   :  { %181 = vmatpush3.bf16.msra.mxu0 %v180_v7  ;;  %v189_v16 = vpack.c.bf16 %v26_v15, %v25_v14  ;;  %v28_v18 = vld [vmem:[%s319_s1 + $0x58] sm:$0xff]  ;;  %v29_v20 = vld [vmem:[%s319_s1 + $0x60] sm:$0xff]  ;;  %v30_v21 = vld [vmem:[%s319_s1 + $0x68] sm:$0xff]  ;;  %p209_p1 = scmp.lt.s32.totalorder %s116_s22, %s116_s22 }
   0x9   :  { %182 = vmatprep.subr.bf16.mxu0 %v228_v3  ;;  %v192_v19 = vpack.c.bf16 %v28_v18, %v27_v17  ;;  %v195_v22 = vpack.c.bf16 %v30_v21, %v29_v20  ;;  %v31_v23 = vld [vmem:[%s319_s1 + $0x70] sm:$0xff]  ;;  %v32_v24 = vld [vmem:[%s319_s1 + $0x78] sm:$0xff]  ;;  %v16_v26 = vld [vmem:[%s318_s0] sm:$0xff]  ;;  %s204_s1 = scalar_lea.vmem %s116_s22, 128 }
   0xa   :  { %v198_v25 = vpack.c.bf16 %v32_v24, %v31_v23  ;;  %p205_p0 = scmp.ne.s32.totalorder %s116_s22, %s204_s1  ;;  %p210_p2 = scmp.lt.s32.totalorder %s204_s1, %s204_s1 }
   0xc   :  { %184 = vmatpush3.bf16.msra.mxu0 %v183_v10  ;;  %p211_p3 = por %p210_p2, %p209_p1 }
   0xd   :  { %185 = vmatprep.subr.bf16.mxu0 %v228_v3 }
   0xe   :  { %p212_p4 = pnand %p211_p3, %p205_p0 }
  0x10   :  { %187 = vmatpush3.bf16.msra.mxu0 %v186_v13 }
  0x11   :  { %188 = vmatprep.subr.bf16.mxu0 %v228_v3 }
  0x14   :  { %190 = vmatpush3.bf16.msra.mxu0 %v189_v16 }
  0x15   :  { %191 = vmatprep.subr.bf16.mxu0 %v228_v3 }
  0x18   :  { %193 = vmatpush3.bf16.msra.mxu0 %v192_v19 }
  0x19   :  { %194 = vmatprep.subr.bf16.mxu0 %v228_v3 }
  0x1c   :  { %196 = vmatpush3.bf16.msra.mxu0 %v195_v22 }
  0x1d   :  { %197 = vmatprep.subr.bf16.mxu0 %v228_v3 }
  0x20   :  { %199 = vmatpush3.bf16.msra.mxu0 %v198_v25 }
  0x23   :  { %174 = vmatmul.mubr.f32.vlgmr.msra.gmra.mrb[0].mxu0 %v16_v26 }
  0xf6   :  { %v101_v28 = vpop.f32.mrb[0].mxu0 }
  0xf7   :  { %v102_v29 = vadd.f32 %v101_v28, %v34_v27  ;;  %v175_v30 = vpop.f32.mrb[1].mxu0 }
  0xf9   :  { %v123_v31 = vclamps-f32 %v102_v29, 10.0 }
  0xfb   :  { %108 = vst.msk [vmem:[#allocation3] sm:$0xff] %vm107_vm1, %v123_v31 }
  0xfc   :  { %215 = shalt.err (!%p212_p4)
}
  0xfd   :  { %s216_s2 = scalar_lea.hbm %s321_s3, 128 }
  0xfe   :  { %p217_p5 = scmp.ne.s32.totalorder %s321_s3, %s216_s2  ;;  %p220_p6 = scmp.lt.u32.totalorder %s216_s2, %s321_s3 }
 0x100   :  { %p222_p7 = pnand %p220_p6, %p217_p5 }
 0x102   :  { %225 = shalt.err (!%p222_p7)
}
 0x103   :  { %118 = dma.vmem_to_hbm [thread:$0]  %s116_s22, 128, %s321_s3, [#allocation4]  }
 0x104   :  { %226 = dma.done.wait [#allocation4], 128  }
 0x105   :  { %227 = vsyncadd [#allocation4], 4294967168 }
 0x106   :  { %122 = vsyncpa [#allocation4], 1 }

</bundles_post_ra>
